<compile_context>
chip_gen: v6e
topology: v6e:2x2x1
jax: 0.10.0
libtpu: 0.0.40
codegen_flags: <defaults>
</compile_context>

<pallas_src>
import functools
import math

import jax
import jax.numpy as jnp
from jax.experimental import pallas as pl
from jax.experimental.pallas import tpu as pltpu


def _round_up(x, m):
    return ((x + m - 1) // m) * m


def _fc_kernel_resident(x_ref, w_ref, b_ref, o_ref, *, tm):
    # x_ref: (M_pad, C)  fully VMEM-resident activations (DMA'd once total)
    # w_ref: (C, tn)     weight tile (DMA'd once per vocab block)
    # b_ref: (1, tn)     bias tile (f32)
    # o_ref: (tm, tn)    output tile of the (T*B, N) result
    m = pl.program_id(1)
    start = pl.multiple_of(m * tm, tm)
    x = x_ref[pl.ds(start, tm), :]
    acc = jnp.dot(x, w_ref[...], preferred_element_type=jnp.float32)
    o_ref[...] = (acc + b_ref[...]).astype(o_ref.dtype)


def _fc_kernel_stream(x_ref, w_ref, b_ref, o_ref):
    # x_ref: (tm, C) tile (resident across the inner vocab stream)
    acc = jnp.dot(x_ref[...], w_ref[...], preferred_element_type=jnp.float32)
    o_ref[...] = (acc + b_ref[...]).astype(o_ref.dtype)


def ctc_head_forward(x, weight, bias, *, tile_m=256, tile_n=512,
                     compute_dtype=None, out_dtype=None,
                     x_resident_bytes=12 << 20):
    """CTCHead.forward (mid_channels=None): fc(x).permute(1, 0, 2).

    x:      (B, T, C) activations
    weight: (N, C)    nn.Linear weight (out, in)
    bias:   (N,)
    returns (T, B, N)
    """
    B, T, C = x.shape
    N, C_w = weight.shape
    assert C_w == C, (weight.shape, C)
    assert bias.shape == (N,), bias.shape
    out_dtype = out_dtype or x.dtype

    # ---- M (= T*B) tiling: fold batch into the MXU M dimension --------------
    M = B * T
    tm = min(tile_m, _round_up(M, 8))
    m_blocks = pl.cdiv(M, tm)
    M_pad = m_blocks * tm

    # ---- N (vocab) tiling: output stays at exactly N columns (masked store
    # on the last block); only the weight/bias params are padded (cheap) ------
    n_pad128 = _round_up(N, 128)
    tn = min(tile_n, n_pad128)
    n_blocks = pl.cdiv(N, tn)
    n_pad_w = n_blocks * tn           # weight/bias padded width (in-bounds reads)

    # ---- wrapper-side operand prep (all cheap vs. the B*T*N output) ---------
    # permute(1,0,2) fused here: transpose the SMALL input once, output rows
    # come out (t, b)-major so the final reshape to (T, B, N) is free.
    x_flat = jnp.transpose(x, (1, 0, 2)).reshape(M, C)
    if M_pad != M:
        x_flat = jnp.pad(x_flat, ((0, M_pad - M), (0, 0)))
    w_t = weight.T                                     # (C, N): plain MXU RHS
    bias_p = bias
    if n_pad_w != N:
        w_t = jnp.pad(w_t, ((0, 0), (0, n_pad_w - N)))
        bias_p = jnp.pad(bias, (0, n_pad_w - N))
    bias2d = bias_p.reshape(1, n_pad_w).astype(jnp.float32)
    if compute_dtype is not None:
        # Cast BEFORE the kernel so the DMA moves the narrow dtype.
        x_flat = x_flat.astype(compute_dtype)
        w_t = w_t.astype(compute_dtype)
    # NOTE: in production, pad/transpose/cast the parameters once at load time.

    csize = jnp.dtype(x_flat.dtype).itemsize
    osize = jnp.dtype(out_dtype).itemsize
    x_bytes = M_pad * C * csize
    w_tile_bytes = C * tn * csize
    o_tile_bytes = tm * tn * osize
    x_resident = x_bytes <= x_resident_bytes

    if x_resident:
        # Vocab axis OUTERMOST: weight block index is constant across the
        # inner M loop -> each weight tile is fetched from HBM exactly once.
        # x uses a constant-index full-array block -> fetched once, resident.
        # On v7x megacore the outer (parallel) vocab axis is sharded, so each
        # TensorCore streams only half the weight.
        grid = (n_blocks, m_blocks)
        in_specs = [
            pl.BlockSpec((M_pad, C), lambda n, m: (0, 0)),   # x, resident
            pl.BlockSpec((C, tn), lambda n, m: (0, n)),      # weight
            pl.BlockSpec((1, tn), lambda n, m: (0, n)),      # bias
        ]
        out_spec = pl.BlockSpec((tm, tn), lambda n, m: (m, n))
        kernel = functools.partial(_fc_kernel_resident, tm=tm)
        est = 2 * x_bytes + 2 * w_tile_bytes + 2 * o_tile_bytes + 2 * tn * 4
        weight_reads = n_pad_w * C * csize
    else:
        # Fallback when x does not fit VMEM: x tile is resident across the
        # inner vocab stream (read once total); weight re-streamed m_blocks
        # times (m_blocks is small because batch is folded into M).
        grid = (m_blocks, n_blocks)
        in_specs = [
            pl.BlockSpec((tm, C), lambda m, n: (m, 0)),
            pl.BlockSpec((C, tn), lambda m, n: (0, n)),
            pl.BlockSpec((1, tn), lambda m, n: (0, n)),
        ]
        out_spec = pl.BlockSpec((tm, tn), lambda m, n: (m, n))
        kernel = _fc_kernel_stream
        est = (2 * tm * C * csize + 2 * w_tile_bytes + 2 * o_tile_bytes
               + 2 * tn * 4)
        weight_reads = m_blocks * n_pad_w * C * csize

    # Explicit VMEM budget; stays well under v7x's 64 MiB.
    vmem_limit = int(min(max(est + (4 << 20), 32 << 20), 48 << 20))

    out_flat = pl.pallas_call(
        kernel,
        out_shape=jax.ShapeDtypeStruct((M, N), out_dtype),
        grid_spec=pltpu.PrefetchScalarGridSpec(
            num_scalar_prefetch=0,
            grid=grid,
            in_specs=in_specs,
            out_specs=out_spec,
        ),
        compiler_params=pltpu.CompilerParams(
            dimension_semantics=("parallel", "parallel"),
            vmem_limit_bytes=vmem_limit,
        ),
        cost_estimate=pl.CostEstimate(
            flops=2 * M * C * N,
            transcendentals=0,
            bytes_accessed=M_pad * C * csize + weight_reads + M * N * osize,
        ),
    )(x_flat, w_t, bias2d)

    # Rows are (t, b)-major -> free contiguous reshape; no crop, no transpose.
    return out_flat.reshape(T, B, N)


def init_ctc_head_params(key, in_channels, out_channels):
    """Deterministic init mirroring CTCHead._init_weights:
    uniform(-stdv, stdv) with stdv = 1/sqrt(in_channels)."""
    stdv = 1.0 / math.sqrt(in_channels * 1.0)
    k_w, k_b = jax.random.split(key)
    weight = jax.random.uniform(
        k_w, (out_channels, in_channels), jnp.float32, minval=-stdv, maxval=stdv
    )
    bias = jax.random.uniform(
        k_b, (out_channels,), jnp.float32, minval=-stdv, maxval=stdv
    )
    return weight, bias


if __name__ == "__main__":
    key = jax.random.PRNGKey(0)
    k1, k2, k3, k4 = jax.random.split(key, 4)

    def reference(x, w, b):
        return jnp.transpose(jnp.einsum("btc,oc->bto", x, w) + b, (1, 0, 2))

    # Case 1: lane-aligned vocab, f32 path (x fully resident, weight once).
    x1 = jax.random.normal(k1, (2, 8, 32), dtype=jnp.float32)
    w1, b1 = init_ctc_head_params(k2, 32, 256)
    out1 = jax.block_until_ready(ctc_head_forward(x1, w1, b1))
    ref1 = reference(x1, w1, b1)
    assert out1.shape == (8, 2, 256), out1.shape
    assert jnp.allclose(out1, ref1, atol=1e-5, rtol=1e-5)

    # Case 2: vocab (37) not a multiple of 128 -> masked-lane output store.
    x2 = jax.random.normal(k3, (2, 16, 32), dtype=jnp.float32)
    w2, b2 = init_ctc_head_params(k4, 32, 37)
    out2 = jax.block_until_ready(ctc_head_forward(x2, w2, b2))
    ref2 = reference(x2, w2, b2)
    assert out2.shape == (16, 2, 37), out2.shape
    assert jnp.allclose(out2, ref2, atol=1e-5, rtol=1e-5)

    # Case 3: bf16 MXU operands cast in the wrapper (production perf path).
    out3 = jax.block_until_ready(
        ctc_head_forward(x1, w1, b1, compute_dtype=jnp.bfloat16))
    assert out3.shape == (8, 2, 256), out3.shape
    assert jnp.allclose(out3, ref1, atol=2e-2, rtol=2e-2)

    # Case 4: force the non-resident (streamed-x) fallback path.
    out4 = jax.block_until_ready(
        ctc_head_forward(x2, w2, b2, x_resident_bytes=0))
    assert out4.shape == (16, 2, 37), out4.shape
    assert jnp.allclose(out4, ref2, atol=1e-5, rtol=1e-5)

    print("KERNEL_OK")
</pallas_src>

<mosaic_0001>
module attributes {stable_mosaic.version = 11 : i64} {
  func.func @_fc_kernel_resident(%arg0: i32, %arg1: i32, %arg2: memref<16x32xf32, #tpu.memory_space<vmem>>, %arg3: memref<32x256xf32, #tpu.memory_space<vmem>>, %arg4: memref<1x256xf32, #tpu.memory_space<vmem>>, %arg5: memref<16x256xf32, #tpu.memory_space<vmem>>) attributes {dimension_semantics = [#tpu.dimension_semantics<parallel>, #tpu.dimension_semantics<parallel>], iteration_bounds = array<i64: 1, 1>, scalar_prefetch = 0 : i64, scratch_operands = 0 : i64, tpu.core_type = #tpu.core_type<tc>, window_params = [{pipeline_mode = #tpu.pipeline_mode<synchronous>, transform_indices = @transform_0, window_bounds = array<i64: 16, 32>}, {transform_indices = @transform_1, window_bounds = array<i64: 32, 256>}, {transform_indices = @transform_2, window_bounds = array<i64: 1, 256>}, {transform_indices = @transform_3, window_bounds = array<i64: 16, 256>}]} {
    %c16_i32 = arith.constant 16 : i32
    %0 = arith.muli %arg1, %c16_i32 : i32
    %1 = tpu.assume_multiple %0, 16 : i32
    %2 = arith.index_cast %1 : i32 to index
    %c0 = arith.constant 0 : index
    %3 = vector.load %arg2[%2, %c0] : memref<16x32xf32, #tpu.memory_space<vmem>>, vector<16x32xf32>
    %c0_0 = arith.constant 0 : index
    %c0_1 = arith.constant 0 : index
    %4 = vector.load %arg3[%c0_0, %c0_1] : memref<32x256xf32, #tpu.memory_space<vmem>>, vector<32x256xf32>
    %cst = arith.constant dense<0.000000e+00> : vector<16x256xf32>
    %5 = tpu.matmul %3, %4, %cst {dimension_numbers = #tpu.dot_dimension_numbers<[1], [0], [0], [1], [0, 0, 1, 1], [], []>} : vector<16x32xf32>, vector<32x256xf32>, vector<16x256xf32> -> vector<16x256xf32>
    %c0_2 = arith.constant 0 : index
    %c0_3 = arith.constant 0 : index
    %6 = vector.load %arg4[%c0_2, %c0_3] : memref<1x256xf32, #tpu.memory_space<vmem>>, vector<1x256xf32>
    %7 = vector.broadcast %6 : vector<1x256xf32> to vector<16x256xf32>
    %8 = arith.addf %5, %7 : vector<16x256xf32>
    %c0_4 = arith.constant 0 : index
    %c0_5 = arith.constant 0 : index
    %9 = vector.load %arg5[%c0_4, %c0_5] : memref<16x256xf32, #tpu.memory_space<vmem>>, vector<16x256xf32>
    tpu.vector_store %arg5[%c0_4, %c0_5], %8 {strides = array<i32>} : memref<16x256xf32, #tpu.memory_space<vmem>>, vector<16x256xf32>,
    return
  }
  func.func @transform_0(%arg0: i32, %arg1: i32) -> (i32, i32) {
    %c0_i32 = arith.constant 0 : i32
    %c0_i32_0 = arith.constant 0 : i32
    %c0_i32_1 = arith.constant 0 : i32
    return %c0_i32, %c0_i32_0 : i32, i32
  }
  func.func @transform_1(%arg0: i32, %arg1: i32) -> (i32, i32) {
    %c0_i32 = arith.constant 0 : i32
    %c0_i32_0 = arith.constant 0 : i32
    return %c0_i32, %arg0 : i32, i32
  }
  func.func @transform_2(%arg0: i32, %arg1: i32) -> (i32, i32) {
    %c0_i32 = arith.constant 0 : i32
    %c0_i32_0 = arith.constant 0 : i32
    return %c0_i32, %arg0 : i32, i32
  }
  func.func @transform_3(%arg0: i32, %arg1: i32) -> (i32, i32) {
    %c0_i32 = arith.constant 0 : i32
    return %arg1, %arg0 : i32, i32
  }
}

</mosaic_0001>

<bundles_post_ra>
// kernel: tpu_custom_call.1
= control target key start
LH: loop header
LB: loop body
LE: loop exit
PB: predicated region body
PF: predicated region fallthrough
CT: control target
= control target key end

     0   :  { %8 = vsyncpa [#allocation3], 0  ;;  %s303_s0 = inlined_call_operand.hbm [shape: f32[16,32], index: 0, kind: input, shape index: {}]   ;;  %s304_s1 = inlined_call_operand.hbm [shape: f32[32,256], index: 1, kind: input, shape index: {}]   ;;  %s305_s2 = inlined_call_operand.vmem [shape: f32[1,256], index: 2, kind: input, shape index: {}]   ;;  %s306_s3 = inlined_call_operand.hbm [shape: f32[16,256], index: 3, kind: output, shape index: {}]  }
   0x1   :  { %9 = vsyncpa [#allocation6], 0 }
   0x2   :  { %10 = vsyncpa [#allocation4], 0  ;;  %s257_s12 = smov [#allocation2]  }
   0x3   :  { %s16_s13 = sshll.u32 %s257_s12, 4  ;;  %s17_s13 = int_to_ptr.vmem [resolvable:$true] %s16_s13 }
   0x4   :  { %s199_s14 = scalar_lea.vmem %s17_s13, 256  ;;  %p204_p1 = scmp.lt.s32.totalorder %s17_s13, %s17_s13 }
   0x5   :  { %p200_p0 = scmp.ne.s32.totalorder %s17_s13, %s199_s14  ;;  %p205_p2 = scmp.lt.s32.totalorder %s199_s14, %s199_s14 }
   0x7   :  { %p206_p3 = por %p205_p2, %p204_p1 }
   0x9   :  { %p207_p4 = pnand %p206_p3, %p200_p0 }
   0xb   :  { %210 = shalt.err (!%p207_p4)
}
   0xc   :  { %s258_s15 = smov 128   ;;  %s259_s16 = smov 8  }
   0xd   :  { %22 = dma.hbm_to_vmem [thread:$0]  %s303_s0, 256, %s17_s13, [#allocation3], %s258_s15, %s258_s15, %s259_s16  }
   0xe   :  { %s260_s19 = smov [#allocation5]  }
   0xf   :  { %s28_s20 = sshll.u32 %s260_s19, 4  ;;  %s29_s20 = int_to_ptr.vmem [resolvable:$true] %s28_s20 }
  0x10   :  { %s219_s21 = scalar_lea.vmem %s29_s20, 1024  ;;  %p224_p6 = scmp.lt.s32.totalorder %s29_s20, %s29_s20 }
  0x11   :  { %p220_p5 = scmp.ne.s32.totalorder %s29_s20, %s219_s21  ;;  %p225_p7 = scmp.lt.s32.totalorder %s219_s21, %s219_s21 }
  0x13   :  { %p226_p8 = por %p225_p7, %p224_p6 }
  0x15   :  { %p227_p9 = pnand %p226_p8, %p220_p5 }
  0x17   :  { %230 = shalt.err (!%p227_p9)
}
  0x18   :  { %s261_s22 = smov 256   ;;  %s262_s23 = smov 16  }
  0x19   :  { %34 = dma.hbm_to_vmem [thread:$0]  %s304_s1, 1024, %s29_s20, [#allocation6], %s261_s22, %s261_s22, %s262_s23  }
  0x1a   :  { %251 = dma.done.wait [#allocation3], 256  }
  0x1b   :  { %252 = vsyncadd [#allocation3], 4294967040 }
  0x1c   :  { %253 = dma.done.wait [#allocation6], 1024  }
  0x1d   :  { %254 = vsyncadd [#allocation6], 4294966272  ;;  %v263_v0 = vmov 0.0   ;;  %v54_v1 = vld [vmem:[#allocation5 + $0x38] sm:$0xff]  ;;  %v53_v2 = vld [vmem:[#allocation5 + $0x30] sm:$0xff]  ;;  %vm67_vm0 = vcmask 261120   ;;  %v57_v11 = vlaneseq }
  0x1e   :  { %138 = vmatprep.mubr.f32.mxu0 %v263_v0  ;;  %144 = vmatprep.mubr.f32.mxu1 %v263_v0  ;;  %v52_v3 = vld [vmem:[#allocation5 + $0x28] sm:$0xff]  ;;  %v51_v4 = vld [vmem:[#allocation5 + $0x20] sm:$0xff]  ;;  %v50_v5 = vld [vmem:[#allocation5 + $0x18] sm:$0xff]  ;;  %s264_s26 = smov [#allocation7]  }
  0x1f   :  { %98 = vmatprep.subr.mxu0 %v54_v1  ;;  %175 = vmatprep.subr.mxu1 %v54_v1  ;;  %v49_v6 = vld [vmem:[#allocation5 + $0x10] sm:$0xff]  ;;  %v48_v7 = vld [vmem:[#allocation5 + $0x8] sm:$0xff]  ;;  %v47_v8 = vld [vmem:[#allocation5] sm:$0xff]  ;;  %v58_v12 = vshrl.u32 %v57_v11, 7  ;;  %s160_s27 = sshll.u32 %s264_s26, 4  ;;  %s161_s27 = int_to_ptr.vmem [resolvable:$true] %s160_s27 }
  0x20   :  { %99 = vmatpush1.msra.mxu0 %v53_v2  ;;  %179 = vmatpush1.msra.mxu1 %v53_v2  ;;  %v45_v9 = vld [vmem:[#allocation2] sm:$0xff]  ;;  %v46_v10 = vld [vmem:[#allocation2 + $0x8] sm:$0xff]  ;;  %s231_s28 = scalar_lea.vmem %s161_s27, 512  ;;  %p236_p11 = scmp.lt.s32.totalorder %s161_s27, %s161_s27 }
  0x21   :  { %100 = vmatprep.subr.mxu0 %v52_v3  ;;  %176 = vmatprep.subr.mxu1 %v52_v3  ;;  %v59_v13 = vsub.s32 0, %v58_v12  ;;  %v55_v14 = vld [vmem:[%s305_s2] sm:$0x3]  ;;  %v63_v15 = vsub.s32 1, %v58_v12  ;;  %p232_p10 = scmp.ne.s32.totalorder %s161_s27, %s231_s28  ;;  %p237_p12 = scmp.lt.s32.totalorder %s231_s28, %s231_s28 }
  0x22   :  { %101 = vmatpush1.msra.mxu0 %v51_v4  ;;  %180 = vmatpush1.msra.mxu1 %v51_v4 }
  0x23   :  { %102 = vmatprep.subr.mxu0 %v50_v5  ;;  %177 = vmatprep.subr.mxu1 %v50_v5  ;;  %v60_v16 = vrot.slane %v55_v14, %v59_v13  ;;  %v64_v17 = vrot.slane %v55_v14, %v63_v15  ;;  %p238_p13 = por %p237_p12, %p236_p11 }
  0x24   :  { %103 = vmatpush1.msra.mxu0 %v49_v6  ;;  %181 = vmatpush1.msra.mxu1 %v49_v6 }
  0x25   :  { %104 = vmatprep.subr.mxu0 %v48_v7  ;;  %178 = vmatprep.subr.mxu1 %v48_v7  ;;  %p239_p0 = pnand %p238_p13, %p232_p10 }
  0x26   :  { %105 = vmatpush1.msra.mxu0 %v47_v8  ;;  %182 = vmatpush1.msra.mxu1 %v47_v8 }
  0x27   :  { %173 = vmatmul.mubr.msk.f32.vlgmr.msra.gmra.mxu0 %vm67_vm0, %v45_v9  ;;  %174 = vmatmul.mubr.msk.f32.vlgmr.msra.gmra.mxu1 %vm67_vm0, %v46_v10 }
  0xe7   :  { %v140_v18 = vpop.f32.mrf.mxu0  ;;  %v146_v19 = vpop.f32.mrf.mxu1 }
  0xe8   :  { %v141_v20 = vadd.f32 %v140_v18, %v60_v16  ;;  %v147_v21 = vadd.f32 %v146_v19, %v60_v16 }
  0xe9   :  { %v142_v22 = vpop.f32.mrf.mxu0  ;;  %v148_v23 = vpop.f32.mrf.mxu1 }
  0xea   :  { %151 = vst [vmem:[#allocation7] sm:$0xff] %v141_v20  ;;  %153 = vst [vmem:[#allocation7 + $0x10] sm:$0xff] %v147_v21  ;;  %v143_v24 = vadd.f32 %v142_v22, %v64_v17  ;;  %v149_v25 = vadd.f32 %v148_v23, %v64_v17 }
  0xec   :  { %152 = vst [vmem:[#allocation7 + $0x8] sm:$0xff] %v143_v24  ;;  %154 = vst [vmem:[#allocation7 + $0x18] sm:$0xff] %v149_v25 }
  0xed   :  { %242 = shalt.err (!%p239_p0)
}
  0xee   :  { %166 = dma.vmem_to_hbm [thread:$0]  %s161_s27, 512, %s306_s3, [#allocation4], %s261_s22, %s261_s22, %s262_s23  }
  0xef   :  { %255 = dma.done.wait [#allocation4], 512  }
  0xf0   :  { %256 = vsyncadd [#allocation4], 4294966784 }
  0xf1   :  { %170 = vsyncpa [#allocation3], 1 }
  0xf2   :  { %171 = vsyncpa [#allocation6], 1 }
  0xf3   :  { %172 = vsyncpa [#allocation4], 1 }

</bundles_post_ra>
